<compile_context>
chip_gen: v7x
topology: tpu7x:2x2x1
jax: 0.10.0
libtpu: 0.0.40
codegen_flags: <defaults>
</compile_context>

<pallas_src>
import functools
import math

import jax
import jax.numpy as jnp
from jax import lax
from jax.experimental import pallas as pl
from jax.experimental.pallas import tpu as pltpu


_SUBLANE = 8
_TARGET_IN_BLOCK_BYTES = 8 * 1024 * 1024     # per-step input block target
_VMEM_CEILING_BYTES = 48 * 1024 * 1024       # headroom under v7x's 64 MiB VMEM


def _choose_tile_n(n, f, itemsize):
    """Pick how many samples (rows of width f) to process per grid step."""
    sub = max(_SUBLANE, 32 // max(1, itemsize))    # 8 f32 / 16 bf16 / 32 int8
    row_bytes = max(1, f * itemsize)
    tn = max(1, _TARGET_IN_BLOCK_BYTES // row_bytes)
    if tn >= n:
        # Whole batch fits in one block.  Split into >= 2 full-sublane blocks
        # when possible so the 'parallel' axis can feed both v7x TensorCores.
        if n >= 2 * sub:
            half = -(-n // 2)
            return -(-half // sub) * sub
        return n                                   # block dim == full array dim
    return max(sub, (tn // sub) * sub)


# ---------------------------------------------------------------------------
# Pallas kernel
# ---------------------------------------------------------------------------
def _layer_norm_kernel(x_ref, *rest, eps, count, valid, affine):
    """Per-sample LayerNorm over a (TN, F) block of flattened samples.

    x_ref : (TN, F)  TN samples, each a lane-dense flattened (C*H*W) row
    g_ref : (1, F)   gamma pre-broadcast per feature (only if affine)
    b_ref : (1, F)   beta  pre-broadcast per feature (only if affine)
    o_ref : (TN, F)
    """
    if affine:
        g_ref, b_ref, o_ref = rest
    else:
        (o_ref,) = rest

    x = x_ref[...].astype(jnp.float32)                 # (TN, F)
    padded = valid != x.shape[-1]                      # static python bool

    if padded:
        lane = lax.broadcasted_iota(jnp.int32, x.shape, 1)
        in_row = lane < valid
        xz = jnp.where(in_row, x, 0.0)
    else:
        xz = x

    # Two-pass per-sample statistics on the VMEM-resident tile (per-row only,
    # so garbage rows of a partial boundary block never leak across samples).
    mean = jnp.sum(xz, axis=-1, keepdims=True) * (1.0 / count)     # (TN, 1)
    dev = x - mean
    if padded:
        dev = jnp.where(in_row, dev, 0.0)
    ssd = jnp.sum(dev * dev, axis=-1, keepdims=True)               # (TN, 1)

    # torch.std default is unbiased (ddof=1).  count == 1 -> NaN, like torch.
    inv_ddof = 1.0 / (count - 1.0) if count > 1.0 else float("nan")
    std = jnp.sqrt(ssd * inv_ddof)
    denom = std + eps
    inv = pl.reciprocal(denom, approx=True)            # EUP slot (idle here)
    inv = inv * (2.0 - denom * inv)                    # Newton step, (TN,1) only

    if affine:
        a = g_ref[...] * inv                           # (1,F)*(TN,1) -> (TN,F)
        o_ref[...] = (x * a + (b_ref[...] - mean * a)).astype(o_ref.dtype)
    else:
        o_ref[...] = (dev * inv).astype(o_ref.dtype)


# ---------------------------------------------------------------------------
# wrapper
# ---------------------------------------------------------------------------
def layer_norm(x, gamma=None, beta=None, *, eps=1e-5, affine=True):
    """x: (N, C, *spatial) float array.  gamma/beta: (C,) if affine."""
    orig_shape = x.shape
    n = x.shape[0]
    c = x.shape[1] if x.ndim > 1 else 1
    chw = int(math.prod(x.shape[1:])) if x.ndim > 1 else 1
    hw = chw // c

    xr = x.reshape(n, chw)

    # Lane-dense layout: pad the feature dim up to a multiple of 128 so stores
    # are unmasked; the padding is masked out of the statistics in-kernel.
    f = -(-chw // 128) * 128
    if f != chw:
        xr = jnp.pad(xr, ((0, 0), (0, f - chw)))

    in_itemsize = int(jnp.dtype(xr.dtype).itemsize)
    out_itemsize = int(jnp.dtype(x.dtype).itemsize)
    tn = _choose_tile_n(n, f, in_itemsize)
    grid = (pl.cdiv(n, tn),)

    kernel = functools.partial(_layer_norm_kernel, eps=float(eps),
                               count=float(chw), valid=chw, affine=affine)

    in_specs = [pl.BlockSpec((tn, f), lambda i: (i, 0))]
    args = [xr]
    if affine:
        # Pre-broadcast per-channel gamma/beta to one lane-dense (1, F) row so
        # the kernel does plain row-broadcast FMAs (no lane-dim-1 blocks).
        g_row = jnp.repeat(gamma.astype(jnp.float32).reshape(c), hw)
        b_row = jnp.repeat(beta.astype(jnp.float32).reshape(c), hw)
        if f != chw:
            g_row = jnp.pad(g_row, (0, f - chw))
            b_row = jnp.pad(b_row, (0, f - chw))
        in_specs += [pl.BlockSpec((1, f), lambda i: (0, 0)),
                     pl.BlockSpec((1, f), lambda i: (0, 0))]
        args += [g_row.reshape(1, f), b_row.reshape(1, f)]

    # Pipelined footprint ~ 2x (input block + output block) + constants.
    block_bytes = tn * f * (in_itemsize + out_itemsize)
    const_bytes = (2 * f * 4) if affine else 0
    vmem_limit = int(min(_VMEM_CEILING_BYTES,
                         max(2 * block_bytes + 2 * const_bytes + (1 << 20),
                             16 << 20)))

    cost = pl.CostEstimate(
        flops=int(6 * n * chw),
        transcendentals=int(2 * n),
        bytes_accessed=int(n * chw * (in_itemsize + out_itemsize) + const_bytes))

    out = pl.pallas_call(
        kernel,
        out_shape=jax.ShapeDtypeStruct((n, f), x.dtype),
        grid=grid,
        in_specs=in_specs,
        out_specs=pl.BlockSpec((tn, f), lambda i: (i, 0)),
        compiler_params=pltpu.CompilerParams(
            dimension_semantics=("parallel",),
            vmem_limit_bytes=vmem_limit),
        cost_estimate=cost,
    )(*args)

    if f != chw:
        out = out[:, :chw]
    return out.reshape(orig_shape)


# ---------------------------------------------------------------------------
# pure-JAX reference (mirrors the PyTorch module exactly)
# ---------------------------------------------------------------------------
def layer_norm_ref(x, gamma, beta, *, eps=1e-5, affine=True):
    N = x.shape[0]
    xf = x.reshape(N, -1).astype(jnp.float32)
    mean = jnp.mean(xf, axis=1)
    var_unbiased = jnp.sum(jnp.square(xf - mean[:, None]), axis=1) / (xf.shape[1] - 1)
    std = jnp.sqrt(var_unbiased)
    bshape = (N,) + (1,) * (x.ndim - 1)
    y = (x - mean.reshape(bshape)) / (std.reshape(bshape) + eps)
    if affine:
        gshape = (1, -1) + (1,) * (x.ndim - 2)
        y = y * gamma.reshape(gshape) + beta.reshape(gshape)
    return y


if __name__ == "__main__":
    key = jax.random.PRNGKey(0)
    kx, kg = jax.random.split(key)

    N, C, H, W = 2, 4, 16, 16
    x = jax.random.normal(kx, (N, C, H, W), jnp.float32)
    # PyTorch init: gamma ~ U[0, 1), beta = 0
    gamma = jax.random.uniform(kg, (C,), jnp.float32)
    beta = jnp.zeros((C,), jnp.float32)

    fwd = jax.jit(functools.partial(layer_norm, eps=1e-5, affine=True))
    out = fwd(x, gamma, beta)
    jax.block_until_ready(out)

    ref = layer_norm_ref(x, gamma, beta, eps=1e-5, affine=True)
    assert out.shape == (N, C, H, W), out.shape
    assert bool(jnp.all(jnp.isfinite(out)))
    max_err = float(jnp.max(jnp.abs(out - ref)))
    assert bool(jnp.allclose(out, ref, atol=1e-4, rtol=1e-3)), max_err
    print("KERNEL_OK")
</pallas_src>

<mosaic_0001>
module attributes {stable_mosaic.version = 11 : i64} {
  func.func @_layer_norm_kernel(%arg0: i32, %arg1: memref<2x1024xf32, #tpu.memory_space<vmem>>, %arg2: memref<1x1024xf32, #tpu.memory_space<vmem>>, %arg3: memref<1x1024xf32, #tpu.memory_space<vmem>>, %arg4: memref<2x1024xf32, #tpu.memory_space<vmem>>) attributes {dimension_semantics = [#tpu.dimension_semantics<parallel>], iteration_bounds = array<i64: 1>, scalar_prefetch = 0 : i64, scratch_operands = 0 : i64, tpu.core_type = #tpu.core_type<tc>, window_params = [{transform_indices = @transform_0, window_bounds = array<i64: 2, 1024>}, {pipeline_mode = #tpu.pipeline_mode<synchronous>, transform_indices = @transform_1, window_bounds = array<i64: 1, 1024>}, {pipeline_mode = #tpu.pipeline_mode<synchronous>, transform_indices = @transform_2, window_bounds = array<i64: 1, 1024>}, {transform_indices = @transform_3, window_bounds = array<i64: 2, 1024>}]} {
    %c0 = arith.constant 0 : index
    %c0_0 = arith.constant 0 : index
    %0 = vector.load %arg1[%c0, %c0_0] : memref<2x1024xf32, #tpu.memory_space<vmem>>, vector<2x1024xf32>
    %cst = arith.constant dense<0.000000e+00> : vector<2xf32>
    %1 = vector.multi_reduction <add>, %0, %cst [1] : vector<2x1024xf32> to vector<2xf32>
    %2 = vector.shape_cast %1 : vector<2xf32> to vector<2x1xf32>
    %cst_1 = arith.constant 9.765625E-4 : f32
    %3 = vector.broadcast %cst_1 : f32 to vector<2x1xf32>
    %4 = arith.mulf %2, %3 : vector<2x1xf32>
    %5 = vector.broadcast %4 : vector<2x1xf32> to vector<2x1024xf32>
    %6 = arith.subf %0, %5 : vector<2x1024xf32>
    %7 = arith.mulf %6, %6 : vector<2x1024xf32>
    %cst_2 = arith.constant dense<0.000000e+00> : vector<2xf32>
    %8 = vector.multi_reduction <add>, %7, %cst_2 [1] : vector<2x1024xf32> to vector<2xf32>
    %9 = vector.shape_cast %8 : vector<2xf32> to vector<2x1xf32>
    %cst_3 = arith.constant 9.77517105E-4 : f32
    %10 = vector.broadcast %cst_3 : f32 to vector<2x1xf32>
    %11 = arith.mulf %9, %10 : vector<2x1xf32>
    %12 = math.sqrt %11 : vector<2x1xf32>
    %cst_4 = arith.constant 9.99999974E-6 : f32
    %13 = vector.broadcast %cst_4 : f32 to vector<2x1xf32>
    %14 = arith.addf %12, %13 : vector<2x1xf32>
    %15 = tpu.reciprocal %14 {approx = true} : vector<2x1xf32> -> vector<2x1xf32>
    %16 = arith.mulf %14, %15 : vector<2x1xf32>
    %cst_5 = arith.constant 2.000000e+00 : f32
    %17 = vector.broadcast %cst_5 : f32 to vector<2x1xf32>
    %18 = arith.subf %17, %16 : vector<2x1xf32>
    %19 = arith.mulf %15, %18 : vector<2x1xf32>
    %c0_6 = arith.constant 0 : index
    %c0_7 = arith.constant 0 : index
    %20 = vector.load %arg2[%c0_6, %c0_7] : memref<1x1024xf32, #tpu.memory_space<vmem>>, vector<1x1024xf32>
    %21 = vector.broadcast %20 : vector<1x1024xf32> to vector<2x1024xf32>
    %22 = vector.broadcast %19 : vector<2x1xf32> to vector<2x1024xf32>
    %23 = arith.mulf %21, %22 : vector<2x1024xf32>
    %24 = arith.mulf %0, %23 : vector<2x1024xf32>
    %c0_8 = arith.constant 0 : index
    %c0_9 = arith.constant 0 : index
    %25 = vector.load %arg3[%c0_8, %c0_9] : memref<1x1024xf32, #tpu.memory_space<vmem>>, vector<1x1024xf32>
    %26 = vector.broadcast %4 : vector<2x1xf32> to vector<2x1024xf32>
    %27 = arith.mulf %26, %23 : vector<2x1024xf32>
    %28 = vector.broadcast %25 : vector<1x1024xf32> to vector<2x1024xf32>
    %29 = arith.subf %28, %27 : vector<2x1024xf32>
    %30 = arith.addf %24, %29 : vector<2x1024xf32>
    %c0_10 = arith.constant 0 : index
    %c0_11 = arith.constant 0 : index
    %31 = vector.load %arg4[%c0_10, %c0_11] : memref<2x1024xf32, #tpu.memory_space<vmem>>, vector<2x1024xf32>
    tpu.vector_store %arg4[%c0_10, %c0_11], %30 {strides = array<i32>} : memref<2x1024xf32, #tpu.memory_space<vmem>>, vector<2x1024xf32>,
    return
  }
  func.func @transform_0(%arg0: i32) -> (i32, i32) {
    %c0_i32 = arith.constant 0 : i32
    %c0_i32_0 = arith.constant 0 : i32
    return %arg0, %c0_i32 : i32, i32
  }
  func.func @transform_1(%arg0: i32) -> (i32, i32) {
    %c0_i32 = arith.constant 0 : i32
    %c0_i32_0 = arith.constant 0 : i32
    %c0_i32_1 = arith.constant 0 : i32
    return %c0_i32, %c0_i32_0 : i32, i32
  }
  func.func @transform_2(%arg0: i32) -> (i32, i32) {
    %c0_i32 = arith.constant 0 : i32
    %c0_i32_0 = arith.constant 0 : i32
    %c0_i32_1 = arith.constant 0 : i32
    return %c0_i32, %c0_i32_0 : i32, i32
  }
  func.func @transform_3(%arg0: i32) -> (i32, i32) {
    %c0_i32 = arith.constant 0 : i32
    %c0_i32_0 = arith.constant 0 : i32
    return %arg0, %c0_i32 : i32, i32
  }
}

</mosaic_0001>

<bundles_post_ra>
// kernel: layer_norm.1
= control target key start
LH: loop header
LB: loop body
LE: loop exit
PB: predicated region body
PF: predicated region fallthrough
CT: control target
= control target key end

     0   :  { %v22_v0 = vlaneseq  ;;  %v380_v1 = vmov 1983009808   ;;  %vm60_vm0 = vcmask 1041408   ;;  %v381_v33 = vmov 269488144   ;;  %s491_s0 = inlined_call_operand.vmem [shape: f32[2,1024], index: 0, kind: input, shape index: {}]   ;;  %s492_s1 = inlined_call_operand.vmem [shape: f32[1,1024], index: 1, kind: input, shape index: {}]   ;;  %s493_s2 = inlined_call_operand.vmem [shape: f32[1,1024], index: 2, kind: input, shape index: {}]   ;;  %s494_s3 = inlined_call_operand.vmem [shape: f32[2,1024], index: 3, kind: output, shape index: {}]  }
   0x1   :  { %v20_v2 = vunpack.c.l.s4 %v380_v1  ;;  %v405_v3 = vld [vmem:[%s491_s0] sm:$0xff]  ;;  %v417_v8 = vld [vmem:[%s491_s0 + $0x8] sm:$0xff]  ;;  %v81_v34 = vunpack.c.l.s4 %v381_v33 }
   0x2   :  { %v407_v4 = vshrl.u32 %v22_v0, 7  ;;  %v18_v5 = vcombine.high %v405_v3, %v405_v3  ;;  %v35_v13 = vcombine.high %v417_v8, %v417_v8 }
   0x3   :  { %v21_v6 = vunpack.c.0.s8 %v20_v2  ;;  %v82_v35 = vunpack.c.0.s8 %v81_v34 }
   0x5   :  { %v412_v7 = vsub.s32 %v21_v6, %v407_v4  ;;  %v85_v36 = vsub.s32 %v82_v35, %v407_v4 }
   0x7   :  { %v25_v9 = vrot.slane %v405_v3, %v412_v7  ;;  %v32_v10 = vrot.slane %v18_v5, %v412_v7  ;;  %v42_v14 = vrot.slane %v417_v8, %v412_v7  ;;  %v49_v19 = vrot.slane %v35_v13, %v412_v7 }
   0x9   :  { %v33_v11 = vcombine.high %v25_v9, %v25_v9  ;;  %v34_v12 = vcombine.high %v32_v10, %v32_v10  ;;  %v61_v15 = vsel %vm60_vm0, %v25_v9, 0.0  ;;  %v64_v17 = vsel %vm60_vm0, %v32_v10, 0.0 }
   0xa   :  { %v50_v20 = vcombine.high %v42_v14, %v42_v14  ;;  %v68_v23 = vsel %vm60_vm0, %v42_v14, 0.0  ;;  %v51_v25 = vcombine.high %v49_v19, %v49_v19  ;;  %v72_v28 = vsel %vm60_vm0, %v49_v19, 0.0 }
   0xb   :  { %v62_v16 = vsel %vm60_vm0, %v33_v11, 0.0  ;;  %v66_v21 = vsel %vm60_vm0, %v34_v12, 0.0  ;;  %v174_v19 = vsub.s32 1, %v407_v4 }
   0xc   :  { %v63_v18 = vadd.f32 %v62_v16, %v61_v15  ;;  %v70_v26 = vsel %vm60_vm0, %v50_v20, 0.0  ;;  %v74_v30 = vsel %vm60_vm0, %v51_v25, 0.0  ;;  %v178_v20 = vsub.s32 2, %v407_v4 }
   0xd   :  { %v194_v25 = vsub.s32 6, %v407_v4 }
   0xe   :  { %v65_v22 = vadd.f32 %v64_v17, %v63_v18  ;;  %v170_v17 = vsub.s32 0, %v407_v4  ;;  %v166_v18 = vld [vmem:[%s492_s1] sm:$0xff] }
  0x10   :  { %v67_v24 = vadd.f32 %v66_v21, %v65_v22  ;;  %v182_v21 = vsub.s32 3, %v407_v4 }
  0x12   :  { %v69_v27 = vadd.f32 %v68_v23, %v67_v24  ;;  %v186_v23 = vsub.s32 4, %v407_v4  ;;  %v190_v24 = vsub.s32 5, %v407_v4 }
  0x14   :  { %v71_v29 = vadd.f32 %v70_v26, %v69_v27  ;;  %v198_v26 = vsub.s32 7, %v407_v4  ;;  %v187_v34 = vrot.slane %v166_v18, %v186_v23  ;;  %v191_v35 = vrot.slane %v166_v18, %v190_v24 }
  0x16   :  { %v73_v31 = vadd.f32 %v72_v28, %v71_v29  ;;  %v171_v28 = vrot.slane %v166_v18, %v170_v17  ;;  %v262_v29 = vld [vmem:[%s493_s2] sm:$0xff] }
  0x17   :  { %v291_v4 = vrot.slane %v262_v29, %v186_v23 }
  0x18   :  { %v75_v32 = vadd.f32 %v74_v30, %v73_v31  ;;  %v175_v30 = vrot.slane %v166_v18, %v174_v19  ;;  %v179_v31 = vrot.slane %v166_v18, %v178_v20 }
  0x1a   :  { %76 = vadd.xlane.f32.xlu0 %v75_v32  ;;  %v183_v32 = vrot.slane %v166_v18, %v182_v21 }
  0xa7   :  { %v77_v37 = vpop.xlane.xlu0 %76 }
  0xa8   :  { %v436_v38 = vmul.f32 0.0009765625, %v77_v37  ;;  %v199_v37 = vrot.slane %v166_v18, %v198_v26 }
  0xaa   :  { %v86_v39 = vrot.slane %v436_v38, %v85_v36  ;;  %v195_v36 = vrot.slane %v166_v18, %v194_v25 }
  0xac   :  { %v88_v40 = vsub.f32 %v405_v3, %v86_v39  ;;  %v89_v41 = vsub.f32 %v417_v8, %v86_v39  ;;  %v275_v39 = vrot.slane %v262_v29, %v170_v17 }
  0xae   :  { %v90_v42 = vmul.f32 %v88_v40, %v88_v40  ;;  %v91_v43 = vmul.f32 %v89_v41, %v89_v41  ;;  %v279_v40 = vrot.slane %v262_v29, %v174_v19  ;;  %v283_v41 = vrot.slane %v262_v29, %v178_v20 }
  0xb0   :  { %v94_v44 = vcombine.high %v90_v42, %v90_v42  ;;  %v101_v45 = vrot.slane %v90_v42, %v412_v7  ;;  %v111_v48 = vcombine.high %v91_v43, %v91_v43  ;;  %v118_v50 = vrot.slane %v91_v43, %v412_v7 }
  0xb1   :  { %v287_v43 = vrot.slane %v262_v29, %v182_v21 }
  0xb2   :  { %v108_v46 = vrot.slane %v94_v44, %v412_v7  ;;  %v109_v47 = vcombine.high %v101_v45, %v101_v45  ;;  %v136_v51 = vsel %vm60_vm0, %v101_v45, 0.0  ;;  %v125_v56 = vrot.slane %v111_v48, %v412_v7 }
  0xb3   :  { %v126_v57 = vcombine.high %v118_v50, %v118_v50  ;;  %v143_v60 = vsel %vm60_vm0, %v118_v50, 0.0  ;;  %v295_v44 = vrot.slane %v262_v29, %v190_v24  ;;  %v299_v45 = vrot.slane %v262_v29, %v194_v25 }
  0xb4   :  { %v110_v49 = vcombine.high %v108_v46, %v108_v46  ;;  %v137_v52 = vsel %vm60_vm0, %v109_v47, 0.0  ;;  %v139_v54 = vsel %vm60_vm0, %v108_v46, 0.0  ;;  %v127_v62 = vcombine.high %v125_v56, %v125_v56 }
  0xb5   :  { %v138_v53 = vadd.f32 %v137_v52, %v136_v51  ;;  %v145_v63 = vsel %vm60_vm0, %v126_v57, 0.0  ;;  %v147_v1 = vsel %vm60_vm0, %v125_v56, 0.0 }
  0xb6   :  { %v141_v58 = vsel %vm60_vm0, %v110_v49, 0.0  ;;  %v149_v5 = vsel %vm60_vm0, %v127_v62, 0.0  ;;  %v303_v62 = vrot.slane %v262_v29, %v198_v26 }
  0xb7   :  { %v140_v55 = vadd.f32 %v139_v54, %v138_v53 }
  0xb9   :  { %v142_v59 = vadd.f32 %v141_v58, %v140_v55 }
  0xbb   :  { %v144_v61 = vadd.f32 %v143_v60, %v142_v59 }
  0xbd   :  { %v146_v0 = vadd.f32 %v145_v63, %v144_v61 }
  0xbf   :  { %v148_v2 = vadd.f32 %v147_v1, %v146_v0 }
  0xc1   :  { %v150_v6 = vadd.f32 %v149_v5, %v148_v2 }
  0xc3   :  { %151 = vadd.xlane.f32.xlu0 %v150_v6 }
 0x150   :  { %v152_v9 = vpop.xlane.xlu0 %151 }
 0x151   :  { %v153_v10 = vmul.f32 0.0009775171, %v152_v9 }
 0x153   :  { %376 = vrsqrt.f32 %v153_v10  ;;  %vm156_vm1 = vcmp.eq.f32.partialorder %v153_v10, inf  ;;  %v159_v13 = vand.u32 2147483648, %v153_v10  ;;  %vm158_vm2 = vcmp.eq.f32.partialorder %v153_v10, 0.0 }
 0x15d   :  { %v377_v11 = vpop.eup %376 }
 0x15e   :  { %v155_v12 = vmul.f32 %v377_v11, %v153_v10 }
 0x160   :  { %v157_v14 = vsel %vm156_vm1, %v153_v10, %v155_v12 }
 0x161   :  { %v160_v15 = vsel %vm158_vm2, %v159_v13, %v157_v14 }
 0x162   :  { %v161_v16 = vadd.f32 1e-05, %v160_v15 }
 0x164   :  { %378 = vrcp.f32 %v161_v16 }
 0x16e   :  { %v379_v22 = vpop.eup %378 }
 0x16f   :  { %v163_v27 = vmul.f32 %v379_v22, %v161_v16 }
 0x171   :  { %v164_v33 = vsub.f32 2.0, %v163_v27 }
 0x173   :  { %v165_v42 = vmul.f32 %v379_v22, %v164_v33 }
 0x175   :  { %v208_v46 = vmul.f32 %v171_v28, %v165_v42  ;;  %v209_v47 = vmul.f32 %v175_v30, %v165_v42  ;;  %v210_v48 = vmul.f32 %v179_v31, %v165_v42  ;;  %v211_v49 = vmul.f32 %v183_v32, %v165_v42 }
 0x176   :  { %v212_v50 = vmul.f32 %v187_v34, %v165_v42  ;;  %v213_v51 = vmul.f32 %v191_v35, %v165_v42  ;;  %v214_v52 = vmul.f32 %v195_v36, %v165_v42  ;;  %v215_v53 = vmul.f32 %v199_v37, %v165_v42 }
 0x177   :  { %v224_v54 = vcombine.low %v208_v46, %v209_v47  ;;  %v225_v55 = vcombine.low %v210_v48, %v211_v49  ;;  %v263_v56 = vmul.f32 %v208_v46, %v436_v38  ;;  %v264_v57 = vmul.f32 %v209_v47, %v436_v38 }
 0x178   :  { %v241_v58 = vcombine.low %v212_v50, %v213_v51  ;;  %v242_v59 = vcombine.low %v214_v52, %v215_v53  ;;  %v265_v60 = vmul.f32 %v210_v48, %v436_v38  ;;  %v266_v61 = vmul.f32 %v211_v49, %v436_v38 }
 0x179   :  { %v232_v63 = vrot.slane %v224_v54, %v412_v7  ;;  %v267_v0 = vmul.f32 %v212_v50, %v436_v38  ;;  %v268_v1 = vmul.f32 %v213_v51, %v436_v38  ;;  %v239_v2 = vrot.slane %v225_v55, %v412_v7 }
 0x17a   :  { %v249_v5 = vrot.slane %v241_v58, %v412_v7  ;;  %v269_v6 = vmul.f32 %v214_v52, %v436_v38  ;;  %v270_v9 = vmul.f32 %v215_v53, %v436_v38  ;;  %v256_v10 = vrot.slane %v242_v59, %v412_v7 }
 0x17b   :  { %v312_v11 = vsub.f32 %v275_v39, %v263_v56  ;;  %v313_v12 = vsub.f32 %v279_v40, %v264_v57  ;;  %v314_v13 = vsub.f32 %v283_v41, %v265_v60  ;;  %v315_v14 = vsub.f32 %v287_v43, %v266_v61 }
 0x17c   :  { %v316_v15 = vsub.f32 %v291_v4, %v267_v0  ;;  %v317_v16 = vsub.f32 %v295_v44, %v268_v1  ;;  %v318_v17 = vsub.f32 %v299_v45, %v269_v6  ;;  %v319_v18 = vsub.f32 %v303_v62, %v270_v9 }
 0x17d   :  { %v328_v19 = vcombine.low %v312_v11, %v313_v12  ;;  %v240_v20 = vcombine.low %v232_v63, %v239_v2  ;;  %v329_v21 = vcombine.low %v314_v13, %v315_v14  ;;  %v257_v23 = vcombine.low %v249_v5, %v256_v10 }
 0x17e   :  { %v345_v22 = vcombine.low %v316_v15, %v317_v16  ;;  %v346_v25 = vcombine.low %v318_v17, %v319_v18 }
 0x17f   :  { %v336_v24 = vrot.slane %v328_v19, %v412_v7  ;;  %v343_v38 = vrot.slane %v329_v21, %v412_v7  ;;  %v260_v28 = vmul.f32 %v240_v20, %v405_v3  ;;  %v261_v30 = vmul.f32 %v257_v23, %v417_v8 }
 0x180   :  { %v353_v26 = vrot.slane %v345_v22, %v412_v7  ;;  %v360_v27 = vrot.slane %v346_v25, %v412_v7 }
 0x181   :  { %v344_v29 = vcombine.low %v336_v24, %v343_v38 }
 0x182   :  { %v361_v31 = vcombine.low %v353_v26, %v360_v27 }
 0x183   :  { %v364_v32 = vadd.f32 %v344_v29, %v260_v28 }
 0x184   :  { %v365_v33 = vadd.f32 %v361_v31, %v261_v30 }
 0x185   :  { %366 = vst [vmem:[%s494_s3] sm:$0xff] %v364_v32 }
 0x186   :  { %367 = vst [vmem:[%s494_s3 + $0x8] sm:$0xff] %v365_v33 }

</bundles_post_ra>
